<compile_context>
chip_gen: v5e
topology: v5e:2x2
jax: 0.10.0
libtpu: 0.0.40
codegen_flags: <defaults>
</compile_context>

<pallas_src>
import functools

import jax
import jax.numpy as jnp
from jax.experimental import pallas as pl
from jax.experimental.pallas import tpu as pltpu

EPS = 1e-5
_VMEM_LIMIT = 48 * 1024 * 1024  # <= ~48 MiB: safe headroom on v7x, plenty on v5e/v6e


def _stats_kernel(xt_ref, w1t_ref, b1_ref, sum_ref, sumsq_ref, *,
                  batch, tb, mxu_dtype):
    """Pass 1: accumulate sum and sum-of-squares of relu(fc1(x)) over the batch.

    xt_ref : (10, TB)  f32   batch tile, batch on lanes
    w1t_ref: (50, 10)  mxu_dtype (resident)
    b1_ref : (50, 1)   f32   (resident)
    sum_ref, sumsq_ref: (50, 1) f32 accumulators (constant block index)
    """
    i = pl.program_id(0)

    xt = xt_ref[...].astype(mxu_dtype)
    h = jnp.dot(w1t_ref[...], xt, preferred_element_type=jnp.float32)  # (50, TB)
    h = jnp.maximum(h + b1_ref[...], 0.0)

    # Mask zero-padded batch columns so they do not contribute to the stats.
    col = jax.lax.broadcasted_iota(jnp.int32, h.shape, 1) + i * tb
    h = jnp.where(col < batch, h, 0.0)

    s = jnp.sum(h, axis=1, keepdims=True)        # (50, 1) lane (XLU) reduce
    ss = jnp.sum(h * h, axis=1, keepdims=True)   # (50, 1)

    @pl.when(i == 0)
    def _():
        sum_ref[...] = jnp.zeros_like(sum_ref)
        sumsq_ref[...] = jnp.zeros_like(sumsq_ref)

    sum_ref[...] += s
    sumsq_ref[...] += ss


def _fwd_kernel(xt_ref, w1t_ref, b1_ref, w2s_ref, c_ref, o_ref, *, mxu_dtype):
    """Pass 2: out = sum_f relu(fc1(x))_f * w2_eff_f + c  (BN folded into fc2).

    xt_ref : (10, TB) f32, w1t_ref: (50, 10) mxu_dtype, b1_ref: (50, 1) f32,
    w2s_ref: (50, 1) f32, c_ref: (1, 1) f32, o_ref: (1, TB) f32 (lane-dense).
    """
    xt = xt_ref[...].astype(mxu_dtype)
    h = jnp.dot(w1t_ref[...], xt, preferred_element_type=jnp.float32)  # (50, TB)
    h = jnp.maximum(h + b1_ref[...], 0.0)

    # fc2 on the VPU + sublane reduce -> (1, TB) lane-dense row.
    out = jnp.sum(h * w2s_ref[...], axis=0, keepdims=True) + c_ref[...]
    o_ref[...] = out.astype(o_ref.dtype)


def fake_net_forward(x, params, *, tb=512, mxu_dtype=jnp.bfloat16):
    """x: (B, 10) float32 -> (B, 1) float32 (FakeNet forward, training-mode BN)."""
    w1, b1, gamma, beta, w2, b2 = params
    B = x.shape[0]

    # Tile size: multiple of 128 (lane-dense output), no larger than the padded batch.
    tb = max(128, (min(tb, pl.cdiv(B, 128) * 128) // 128) * 128)
    n_tiles = pl.cdiv(B, tb)
    b_pad = n_tiles * tb

    # Transposed layout: batch on lanes.  (One-time wrapper transpose so the
    # per-tile input DMAs stay contiguous.)
    x_pad = jnp.pad(x.astype(jnp.float32), ((0, b_pad - B), (0, 0)))   # (B_pad, 10)
    xt = x_pad.T                                                        # (10, B_pad)
    w1t = w1.T.astype(mxu_dtype)                                        # (50, 10)
    b1c = b1.reshape(-1, 1).astype(jnp.float32)                         # (50, 1)

    # ---- Pass 1: batch-wide BN statistics (sum, sum of squares) ----
    sum_h, sumsq_h = pl.pallas_call(
        functools.partial(_stats_kernel, batch=B, tb=tb, mxu_dtype=mxu_dtype),
        out_shape=(jax.ShapeDtypeStruct((50, 1), jnp.float32),
                   jax.ShapeDtypeStruct((50, 1), jnp.float32)),
        grid=(n_tiles,),
        in_specs=[
            pl.BlockSpec((10, tb), lambda i: (0, i)),   # x tile
            pl.BlockSpec((50, 10), lambda i: (0, 0)),   # w1^T (resident)
            pl.BlockSpec((50, 1), lambda i: (0, 0)),    # b1 (resident)
        ],
        out_specs=(pl.BlockSpec((50, 1), lambda i: (0, 0)),
                   pl.BlockSpec((50, 1), lambda i: (0, 0))),
        compiler_params=pltpu.CompilerParams(
            dimension_semantics=("arbitrary",),          # cross-tile reduction
            vmem_limit_bytes=_VMEM_LIMIT),
    )(xt, w1t, b1c)

    # ---- Fold BatchNorm (training-mode batch stats, biased variance) into fc2 ----
    inv_b = 1.0 / float(B)
    mean = sum_h * inv_b                                   # (50, 1)
    var = sumsq_h * inv_b - mean * mean                    # biased variance
    scale = gamma.reshape(-1, 1) * jax.lax.rsqrt(var + EPS)           # (50, 1)
    w2s = (w2.astype(jnp.float32) * scale).astype(jnp.float32)        # (50, 1)
    shift = beta.reshape(-1, 1) - mean * scale                         # (50, 1)
    c = (b2.reshape(1, 1) + jnp.sum(shift * w2.astype(jnp.float32))
         ).astype(jnp.float32)                                         # (1, 1)

    # ---- Pass 2: recompute fc1 and apply folded fc2; lane-dense output ----
    out_slab = pl.pallas_call(
        functools.partial(_fwd_kernel, mxu_dtype=mxu_dtype),
        out_shape=jax.ShapeDtypeStruct((1, b_pad), jnp.float32),
        grid=(n_tiles,),
        in_specs=[
            pl.BlockSpec((10, tb), lambda i: (0, i)),   # x tile
            pl.BlockSpec((50, 10), lambda i: (0, 0)),   # w1^T (resident)
            pl.BlockSpec((50, 1), lambda i: (0, 0)),    # b1 (resident)
            pl.BlockSpec((50, 1), lambda i: (0, 0)),    # folded w2 (resident)
            pl.BlockSpec((1, 1), lambda i: (0, 0)),     # folded scalar c
        ],
        out_specs=pl.BlockSpec((1, tb), lambda i: (0, i)),
        compiler_params=pltpu.CompilerParams(
            dimension_semantics=("parallel",),           # megacore on v7x
            vmem_limit_bytes=_VMEM_LIMIT),
    )(xt, w1t, b1c, w2s, c)

    return out_slab[0, :B, None]                          # (B, 1)


def init_params(key):
    """Parameter init matching FakeNet's shapes (PyTorch Linear default init)."""
    k1, k2, k3, k4 = jax.random.split(key, 4)
    lim1 = 1.0 / jnp.sqrt(10.0)
    lim2 = 1.0 / jnp.sqrt(50.0)
    w1 = jax.random.uniform(k1, (10, 50), jnp.float32, -lim1, lim1)
    b1 = jax.random.uniform(k2, (1, 50), jnp.float32, -lim1, lim1)
    gamma = jnp.ones((1, 50), jnp.float32)
    beta = jnp.zeros((1, 50), jnp.float32)
    w2 = jax.random.uniform(k3, (50, 1), jnp.float32, -lim2, lim2)
    b2 = jax.random.uniform(k4, (1, 1), jnp.float32, -lim2, lim2)
    return (w1, b1, gamma, beta, w2, b2)


if __name__ == "__main__":
    key = jax.random.PRNGKey(0)
    pkey, xkey = jax.random.split(key)
    params = init_params(pkey)

    # B not a multiple of the 128-wide tile -> exercises multi-tile BN stat
    # accumulation AND the padded-column masking path.
    B = 200
    x = jax.random.normal(xkey, (B, 10), jnp.float32)

    # f32 MXU path (structural check) and bf16 MXU path (v6e/v7x default).
    out_f32 = jax.block_until_ready(
        fake_net_forward(x, params, tb=128, mxu_dtype=jnp.float32))
    out_bf16 = jax.block_until_ready(
        fake_net_forward(x, params, tb=128, mxu_dtype=jnp.bfloat16))

    assert out_f32.shape == (B, 1) and out_f32.dtype == jnp.float32
    assert out_bf16.shape == (B, 1) and out_bf16.dtype == jnp.float32

    # Pure-JAX reference (same semantics: training-mode BN, biased variance).
    w1, b1, gamma, beta, w2, b2 = params
    h = jnp.maximum(x @ w1 + b1, 0.0)
    mean = jnp.mean(h, axis=0, keepdims=True)
    var = jnp.mean((h - mean) ** 2, axis=0, keepdims=True)
    ref = ((h - mean) / jnp.sqrt(var + EPS) * gamma + beta) @ w2 + b2

    assert jnp.allclose(out_f32, ref, atol=2e-2, rtol=2e-2)
    assert jnp.allclose(out_bf16, ref, atol=5e-2, rtol=5e-2)

    print("KERNEL_OK")
</pallas_src>

<mosaic_0001>
module attributes {stable_mosaic.version = 11 : i64} {
  func.func @_stats_kernel(%arg0: i32, %arg1: memref<10x128xf32, #tpu.memory_space<vmem>>, %arg2: memref<50x10xf32, #tpu.memory_space<vmem>>, %arg3: memref<50x1xf32, #tpu.memory_space<vmem>>, %arg4: memref<50x1xf32, #tpu.memory_space<vmem>>, %arg5: memref<50x1xf32, #tpu.memory_space<vmem>>) attributes {dimension_semantics = [#tpu.dimension_semantics<arbitrary>], iteration_bounds = array<i64: 2>, scalar_prefetch = 0 : i64, scratch_operands = 0 : i64, tpu.core_type = #tpu.core_type<tc>, window_params = [{transform_indices = @transform_0, window_bounds = array<i64: 10, 128>}, {pipeline_mode = #tpu.pipeline_mode<synchronous>, transform_indices = @transform_1, window_bounds = array<i64: 50, 10>}, {pipeline_mode = #tpu.pipeline_mode<synchronous>, transform_indices = @transform_2, window_bounds = array<i64: 50, 1>}, {pipeline_mode = #tpu.pipeline_mode<synchronous>, transform_indices = @transform_3, window_bounds = array<i64: 50, 1>}, {pipeline_mode = #tpu.pipeline_mode<synchronous>, transform_indices = @transform_4, window_bounds = array<i64: 50, 1>}]} {
    %c0 = arith.constant 0 : index
    %c0_0 = arith.constant 0 : index
    %0 = vector.load %arg1[%c0, %c0_0] : memref<10x128xf32, #tpu.memory_space<vmem>>, vector<10x128xf32>
    %c0_1 = arith.constant 0 : index
    %c0_2 = arith.constant 0 : index
    %1 = vector.load %arg2[%c0_1, %c0_2] : memref<50x10xf32, #tpu.memory_space<vmem>>, vector<50x10xf32>
    %cst = arith.constant dense<0.000000e+00> : vector<50x128xf32>
    %2 = tpu.matmul %1, %0, %cst {dimension_numbers = #tpu.dot_dimension_numbers<[1], [0], [0], [1], [0, 0, 1, 1], [], []>} : vector<50x10xf32>, vector<10x128xf32>, vector<50x128xf32> -> vector<50x128xf32>
    %c0_3 = arith.constant 0 : index
    %c0_4 = arith.constant 0 : index
    %3 = vector.load %arg3[%c0_3, %c0_4] : memref<50x1xf32, #tpu.memory_space<vmem>>, vector<50x1xf32>
    %4 = vector.broadcast %3 : vector<50x1xf32> to vector<50x128xf32>
    %5 = arith.addf %2, %4 : vector<50x128xf32>
    %cst_5 = arith.constant 0.000000e+00 : f32
    %6 = vector.broadcast %cst_5 : f32 to vector<50x128xf32>
    %7 = arith.maximumf %5, %6 : vector<50x128xf32>
    %8 = tpu.iota {dimensions = array<i32: 1>} : vector<50x128xi32>
    %c128_i32 = arith.constant 128 : i32
    %9 = arith.muli %arg0, %c128_i32 : i32
    %10 = vector.broadcast %9 : i32 to vector<50x128xi32>
    %11 = arith.addi %8, %10 : vector<50x128xi32>
    %c200_i32 = arith.constant 200 : i32
    %12 = vector.broadcast %c200_i32 : i32 to vector<50x128xi32>
    %13 = arith.cmpi slt, %11, %12 : vector<50x128xi32>
    %cst_6 = arith.constant 0.000000e+00 : f32
    %14 = vector.broadcast %cst_6 : f32 to vector<50x128xf32>
    %15 = arith.select %13, %7, %14 : vector<50x128xi1>, vector<50x128xf32>
    %cst_7 = arith.constant dense<0.000000e+00> : vector<50xf32>
    %16 = vector.multi_reduction <add>, %15, %cst_7 [1] : vector<50x128xf32> to vector<50xf32>
    %17 = vector.shape_cast %16 : vector<50xf32> to vector<50x1xf32>
    %18 = arith.mulf %15, %15 : vector<50x128xf32>
    %cst_8 = arith.constant dense<0.000000e+00> : vector<50xf32>
    %19 = vector.multi_reduction <add>, %18, %cst_8 [1] : vector<50x128xf32> to vector<50xf32>
    %20 = vector.shape_cast %19 : vector<50xf32> to vector<50x1xf32>
    %c0_i32 = arith.constant 0 : i32
    %21 = arith.cmpi eq, %arg0, %c0_i32 : i32
    %22 = arith.extui %21 : i1 to i32
    %c0_i32_9 = arith.constant 0 : i32
    %23 = arith.cmpi ne, %22, %c0_i32_9 : i32
    scf.if %23 {
      %cst_18 = arith.constant 0.000000e+00 : f32
      %30 = vector.broadcast %cst_18 : f32 to vector<50x1xf32>
      %c0_19 = arith.constant 0 : index
      %c0_20 = arith.constant 0 : index
      %31 = vector.load %arg4[%c0_19, %c0_20] : memref<50x1xf32, #tpu.memory_space<vmem>>, vector<50x1xf32>
      tpu.vector_store %arg4[%c0_19, %c0_20], %30 {strides = array<i32>} : memref<50x1xf32, #tpu.memory_space<vmem>>, vector<50x1xf32>,
      %cst_21 = arith.constant 0.000000e+00 : f32
      %32 = vector.broadcast %cst_21 : f32 to vector<50x1xf32>
      %c0_22 = arith.constant 0 : index
      %c0_23 = arith.constant 0 : index
      %33 = vector.load %arg5[%c0_22, %c0_23] : memref<50x1xf32, #tpu.memory_space<vmem>>, vector<50x1xf32>
      tpu.vector_store %arg5[%c0_22, %c0_23], %32 {strides = array<i32>} : memref<50x1xf32, #tpu.memory_space<vmem>>, vector<50x1xf32>,
    } else {
    }
    %c0_10 = arith.constant 0 : index
    %c0_11 = arith.constant 0 : index
    %24 = vector.load %arg4[%c0_10, %c0_11] : memref<50x1xf32, #tpu.memory_space<vmem>>, vector<50x1xf32>
    %25 = arith.addf %24, %17 : vector<50x1xf32>
    %c0_12 = arith.constant 0 : index
    %c0_13 = arith.constant 0 : index
    %26 = vector.load %arg4[%c0_12, %c0_13] : memref<50x1xf32, #tpu.memory_space<vmem>>, vector<50x1xf32>
    tpu.vector_store %arg4[%c0_12, %c0_13], %25 {strides = array<i32>} : memref<50x1xf32, #tpu.memory_space<vmem>>, vector<50x1xf32>,
    %c0_14 = arith.constant 0 : index
    %c0_15 = arith.constant 0 : index
    %27 = vector.load %arg5[%c0_14, %c0_15] : memref<50x1xf32, #tpu.memory_space<vmem>>, vector<50x1xf32>
    %28 = arith.addf %27, %20 : vector<50x1xf32>
    %c0_16 = arith.constant 0 : index
    %c0_17 = arith.constant 0 : index
    %29 = vector.load %arg5[%c0_16, %c0_17] : memref<50x1xf32, #tpu.memory_space<vmem>>, vector<50x1xf32>
    tpu.vector_store %arg5[%c0_16, %c0_17], %28 {strides = array<i32>} : memref<50x1xf32, #tpu.memory_space<vmem>>, vector<50x1xf32>,
    return
  }
  func.func @transform_0(%arg0: i32) -> (i32, i32) {
    %c0_i32 = arith.constant 0 : i32
    %c0_i32_0 = arith.constant 0 : i32
    return %c0_i32, %arg0 : i32, i32
  }
  func.func @transform_1(%arg0: i32) -> (i32, i32) {
    %c0_i32 = arith.constant 0 : i32
    %c0_i32_0 = arith.constant 0 : i32
    %c0_i32_1 = arith.constant 0 : i32
    return %c0_i32, %c0_i32_0 : i32, i32
  }
  func.func @transform_2(%arg0: i32) -> (i32, i32) {
    %c0_i32 = arith.constant 0 : i32
    %c0_i32_0 = arith.constant 0 : i32
    %c0_i32_1 = arith.constant 0 : i32
    return %c0_i32, %c0_i32_0 : i32, i32
  }
  func.func @transform_3(%arg0: i32) -> (i32, i32) {
    %c0_i32 = arith.constant 0 : i32
    %c0_i32_0 = arith.constant 0 : i32
    %c0_i32_1 = arith.constant 0 : i32
    return %c0_i32, %c0_i32_0 : i32, i32
  }
  func.func @transform_4(%arg0: i32) -> (i32, i32) {
    %c0_i32 = arith.constant 0 : i32
    %c0_i32_0 = arith.constant 0 : i32
    %c0_i32_1 = arith.constant 0 : i32
    return %c0_i32, %c0_i32_0 : i32, i32
  }
}

</mosaic_0001>

<bundles_post_ra>
// kernel: tpu_custom_call.1
= control target key start
LH: loop header
LB: loop body
LE: loop exit
PB: predicated region body
PF: predicated region fallthrough
CT: control target
= control target key end

     0   :  { %s601_s15 = smov 0   ;;  %s603_s16 = smov 0   ;;  %s854_s0 = inlined_call_operand.vmem [shape: f32[10,256], index: 0, kind: input, shape index: {}]   ;;  %s855_s1 = inlined_call_operand.vmem [shape: f32[50,10], index: 1, kind: input, shape index: {}]   ;;  %s856_s2 = inlined_call_operand.vmem [shape: f32[50,1], index: 2, kind: input, shape index: {}]   ;;  %s857_s3 = inlined_call_operand.vmem [shape: f32[50,1], index: 3, kind: output, shape index: {0}]   ;;  %s858_s4 = inlined_call_operand.vmem [shape: f32[50,1], index: 4, kind: output, shape index: {1}]  }
   0x1   :  { %s605_s17 = smov 0  }
   0x2 LB: > { %s496_s18 = sadd.s32 4294967295, %s572_s17   ;;  %s618_s19 = sadd.s32 1, %s572_s17   ;;  %s572_s17 = sphi %s605_s17, %s861_s17   ;;  %s568_s16 = sphi %s603_s16, %s860_s16   ;;  %s564_s15 = sphi %s601_s15, %s859_s15  }
   0x3   : > { %s19_s20 = ssub.s32 %s572_s17, %s618_s19  ;;  %s22_s21 = sadd.s32 1, %s568_s16 }
   0x4   : > { %p20_p0 = scmp.eq.s32.totalorder %s19_s20, 0  ;;  %p29_p1 = scmp.ne.s32.totalorder %s568_s16, %s564_s15 }
   0x5   : > { %p30_p2 = scmp.eq.s32.totalorder %s572_s17, 0  ;;  %p498_p4 = scmp.ge.s32.totalorder %s572_s17, 2 }
   0x6   : > { %s627_s22 = scalar_select %p20_p0, %s568_s16, %s22_s21  }
   0x7   : > { %p31_p3 = por %p30_p2, %p29_p1  ;;  %145 = sbr.rel (%p498_p4) target bundleno = 18 (0x12), region = 24 }
   0xc   : > { %148 = sbr.rel (!%p31_p3) target bundleno = 18 (0x12), region = 28  ;;  %s150_s23 = sand.u32 (%p31_p3), 1, %s568_s16  }
   0xd   : > { %s500_s24 = sshll.u32 (%p31_p3), %s572_s17, 3  ;;  %s499_s25 = sshll.u32 (%p31_p3), %s150_s23, 4 }
   0xe   : > { %s154_s28 = scalar_lea.vmem (%p31_p3), %s854_s0, %s500_s24  ;;  %s152_s29 = scalar_lea.vmem (%p31_p3), [#allocation2], %s499_s25 }
   0xf   : > { %v185_v0 = vld [vmem:[%s154_s28] sm:$0xff] (%p31_p3)  ;;  %v187_v1 = vld [vmem:[%s154_s28 + $0x10] sm:$0xff] (%p31_p3) }
  0x10   : > { %186 = vst [vmem:[%s152_s29] sm:$0xff] (%p31_p3), %v185_v0 }
  0x11   : > { %188 = vst [vmem:[%s152_s29 + $0x8] sm:$0xff] %v187_v1 }
  0x12 PF: > { %p501_p5 = scmp.ge.s32.totalorder %s572_s17, 1  ;;  %p193_p6 = scmp.lt.s32.totalorder %s572_s17, 3 }
  0x14   : > { %p194_p7 = pnand %p501_p5, %p193_p6 }
  0x15   : > { %s200_s6 = sand.u32 (!%p194_p7), 1, %s564_s15   ;;  %s511_s14 = sshll.u32 (!%p194_p7), %s496_s18, 7 }
  0x16   : > { %197 = sbr.rel (%p194_p7) target bundleno = 352 (0x160), region = 66  ;;  %s502_s7 = sshll.u32 (!%p194_p7), %s200_s6, 4 }
  0x17   : > { %s202_s10 = scalar_lea.vmem (!%p194_p7), [#allocation2], %s502_s7  ;;  %p512_p8 = scmp.ne.s32.totalorder (!%p194_p7), %s496_s18, 0 }
  0x1b   : > { %v229_v2 = vld [vmem:[%s856_s2] sm:$0xff]  ;;  %v574_v3 = vmov 0   ;;  %vm293_vm0 = vcmask 1041408   ;;  %v235_v4 = vld [vmem:[%s856_s2 + $0x30] sm:$0x3]  ;;  %vm271_vm1 = vcmask 80896   ;;  %v342_v21 = vlaneseq }
  0x1c   : > { %547 = vset.pattern.permute.xlu0 %v574_v3  ;;  %548 = vset.pattern.permute.xlu1 %v574_v3  ;;  %v221_v5 = vld [vmem:[%s202_s10 + $0x8] sm:$0x3]  ;;  %v220_v6 = vld [vmem:[%s202_s10] sm:$0xff]  ;;  %v345_v23 = vstv %s511_s14 }
  0x1d   : > { %238 = vperm.xlu0 %547, %v229_v2   ;;  %268 = vperm.xlu1 %548, %v235_v4   ;;  %v222_v7 = vld [vmem:[%s855_s1] sm:$0xff]  ;;  %v224_v8 = vld [vmem:[%s855_s1 + $0x10] sm:$0xff]  ;;  %v227_v9 = vld [vmem:[%s855_s1 + $0x28] sm:$0xff]  ;;  %v343_v22 = vand.u32 127, %v342_v21 }
  0x1e   : > { %549 = vset.pattern.permute.xlu2 %v574_v3  ;;  %503 = vmatpush.msk.msra.mxu0 %vm293_vm0, %v221_v5  ;;  %v232_v10 = vld [vmem:[%s856_s2 + $0x18] sm:$0xff]  ;;  %v230_v11 = vld [vmem:[%s856_s2 + $0x8] sm:$0xff]  ;;  %v226_v12 = vld [vmem:[%s855_s1 + $0x20] sm:$0xff] }
  0x1f   : > { %515 = vmatpush.msk.msra.mxu1 %vm293_vm0, %v221_v5  ;;  %517 = vmatpush.msk.msra.mxu3 %vm293_vm0, %v221_v5  ;;  %v231_v13 = vld [vmem:[%s856_s2 + $0x10] sm:$0xff]  ;;  %v223_v14 = vld [vmem:[%s855_s1 + $0x8] sm:$0xff]  ;;  %v225_v16 = vld [vmem:[%s855_s1 + $0x18] sm:$0xff]  ;;  %v346_v25 = vadd.s32 %v345_v23, %v343_v22 }
  0x20   : > { %516 = vmatpush.msk.msra.mxu2 %vm293_vm0, %v221_v5  ;;  %312 = vmatpush.msra.mxu0 %v220_v6  ;;  %v228_v15 = vld [vmem:[%s855_s1 + $0x30] sm:$0x3]  ;;  %v233_v17 = vld [vmem:[%s856_s2 + $0x20] sm:$0xff]  ;;  %v234_v18 = vld [vmem:[%s856_s2 + $0x28] sm:$0xff] }
  0x21   : > { %518 = vmatpush.msra.mxu1 %v220_v6  ;;  %520 = vmatpush.msra.mxu3 %v220_v6  ;;  %vm347_vm2 = vcmp.lt.s32.totalorder %v346_v25, 200 }
  0x22   : > { %504 = vmatmul.msk.f32.vlgmr.msra.gmra.mxu0 %vm271_vm1, %v222_v7  ;;  %506 = vmatmul.msk.f32.vlgmr.msra.gmra.mxu1 %vm271_vm1, %v224_v8 }
  0x23   : > { %509 = vmatmul.msk.f32.vlgmr.msra.gmra.mxu3 %vm271_vm1, %v227_v9  ;;  %519 = vmatpush.msra.mxu2 %v220_v6 }
  0x24   : > { %253 = vperm.xlu2 %549, %v232_v10   ;;  %508 = vmatmul.msk.f32.vlgmr.msra.gmra.mxu2 %vm271_vm1, %v226_v12 }
  0x25   : > { %243 = vperm.xlu0 %547, %v230_v11   ;;  %248 = vperm.xlu1 %548, %v231_v13  }
  0x2a   : > { %505 = vmatmul.msk.f32.gmra.mxu0 %vm271_vm1, %v223_v14  ;;  %507 = vmatmul.msk.f32.gmra.mxu1 %vm271_vm1, %v225_v16 }
  0x2b   : > { %510 = vmatmul.msk.f32.gmra.mxu3 %vm271_vm1, %v228_v15 }
  0x2c   : > { %258 = vperm.xlu2 %549, %v233_v17  }
  0x2d   : > { %263 = vperm.xlu0 %547, %v234_v18  }
  0x7e   : > { %v254_v28 = vpop.permute.xlu2 %253 }
  0x86   : > { %v259_v41 = vpop.permute.xlu2 %258 }
  0x8f   : > { %v239_v19 = vpop.permute.xlu0 %238  ;;  %v269_v20 = vpop.permute.xlu1 %268 }
  0x97   : > { %v244_v24 = vpop.permute.xlu0 %243  ;;  %v249_v26 = vpop.permute.xlu1 %248 }
  0x9f   : > { %v314_v27 = vpop.f32.mrf.mxu0  ;;  %v320_v30 = vpop.f32.mrf.mxu1 }
  0xa0   : > { %v315_v29 = vadd.f32 %v314_v27, %v239_v19  ;;  %v321_v31 = vadd.f32 %v320_v30, %v249_v26  ;;  %v264_v36 = vpop.permute.xlu0 %263 }
  0xa2   : > { %v335_v32 = vmax.f32 %v315_v29, 0.0  ;;  %v337_v33 = vmax.f32 %v321_v31, 0.0 }
  0xa4   : > { %v348_v34 = vsel %vm347_vm2, %v335_v32, 0.0  ;;  %v350_v35 = vsel %vm347_vm2, %v337_v33, 0.0 }
  0xa5   : > { %355 = vadd.xlane.f32.xlu1 %v348_v34  ;;  %359 = vadd.xlane.f32.xlu0 %v350_v35  ;;  %v372_v43 = vmul.f32 %v350_v35, %v350_v35  ;;  %v370_v46 = vmul.f32 %v348_v34, %v348_v34 }
  0xa6   : > { %v329_v37 = vpop.f32.mrf.mxu3 }
  0xa7   : > { %v330_v38 = vadd.f32 %v329_v37, %v264_v36  ;;  %v317_v39 = vpop.f32.mrf.mxu0  ;;  %v326_v42 = vpop.f32.mrf.mxu2 }
  0xa8   : > { %v318_v44 = vadd.f32 %v317_v39, %v244_v24  ;;  %v327_v47 = vadd.f32 %v326_v42, %v259_v41  ;;  %v323_v48 = vpop.f32.mrf.mxu1 }
  0xa9   : > { %v340_v40 = vmax.f32 %v330_v38, 0.0  ;;  %v324_v52 = vadd.f32 %v323_v48, %v254_v28 }
  0xaa   : > { %v336_v50 = vmax.f32 %v318_v44, 0.0  ;;  %v339_v53 = vmax.f32 %v327_v47, 0.0 }
  0xab   : > { %v353_v45 = vsel %vm347_vm2, %v340_v40, 0.0  ;;  %v338_v57 = vmax.f32 %v324_v52, 0.0 }
  0xac   : > { %365 = vadd.xlane.f32.xlu2 %v353_v45  ;;  %v349_v55 = vsel %vm347_vm2, %v336_v50, 0.0  ;;  %v352_v59 = vsel %vm347_vm2, %v339_v53, 0.0  ;;  %v375_v62 = vmul.f32 %v353_v45, %v353_v45 }
  0xad   : > { %377 = vadd.xlane.f32.xlu1 %v370_v46  ;;  %381 = vadd.xlane.f32.xlu0 %v372_v43  ;;  %v351_v60 = vsel %vm347_vm2, %v338_v57, 0.0  ;;  %v371_v0 = vmul.f32 %v349_v55, %v349_v55  ;;  %v374_v2 = vmul.f32 %v352_v59, %v352_v59 }
  0xae   : > { %v332_v49 = vpop.f32.mrf.mxu3  ;;  %v373_v61 = vmul.f32 %v351_v60, %v351_v60 }
  0xaf   : > { %v333_v51 = vadd.f32 %v332_v49, %v269_v20 }
  0xb1   : > { %v341_v54 = vmax.f32 %v333_v51, 0.0 }
  0xb3   : > { %v354_v56 = vsel %vm347_vm2, %v341_v54, 0.0 }
  0xb4   : > { %357 = vadd.xlane.f32.xlu2 %v349_v55  ;;  %v367_v58 = vsel %vm293_vm0, %v354_v56, 0.0  ;;  %v376_v63 = vmul.f32 %v354_v56, %v354_v56 }
  0xb5   : > { %363 = vadd.xlane.f32.xlu1 %v352_v59  ;;  %368 = vadd.xlane.f32.xlu0 %v367_v58 }
  0xb6   : > { %v389_v1 = vsel %vm293_vm0, %v376_v63, 0.0 }
  0xbc   : > { %361 = vadd.xlane.f32.xlu2 %v351_v60 }
  0xbd   : > { %383 = vadd.xlane.f32.xlu1 %v373_v61  ;;  %387 = vadd.xlane.f32.xlu0 %v375_v62 }
  0xc4   : > { %379 = vadd.xlane.f32.xlu2 %v371_v0 }
  0xc5   : > { %390 = vadd.xlane.f32.xlu1 %v389_v1 }
  0xcc   : > { %385 = vadd.xlane.f32.xlu2 %v374_v2 }
 0x118   : > { %v356_v3 = vpop.xlane.xlu1 %355  ;;  %v360_v4 = vpop.xlane.xlu0 %359 }
 0x11f   : > { %v366_v5 = vpop.xlane.xlu2 %365 }
 0x120   : > { %v378_v6 = vpop.xlane.xlu1 %377  ;;  %v382_v7 = vpop.xlane.xlu0 %381 }
 0x127   : > { %v358_v8 = vpop.xlane.xlu2 %357 }
 0x128   : > { %v364_v9 = vpop.xlane.xlu1 %363  ;;  %v369_v10 = vpop.xlane.xlu0 %368 }
 0x12f   : > { %v362_v11 = vpop.xlane.xlu2 %361 }
 0x130   : > { %v384_v12 = vpop.xlane.xlu1 %383  ;;  %v388_v13 = vpop.xlane.xlu0 %387 }
 0x137   : > { %v380_v14 = vpop.xlane.xlu2 %379 }
 0x138   : > { %v391_v15 = vpop.xlane.xlu1 %390 }
 0x13b   : > { %395 = sbr.rel (%p512_p8) target bundleno = 335 (0x14f), region = 74 }
 0x13f   : > { %v386_v16 = vpop.xlane.xlu2 %385 }
 0x140   : > { %vm396_vm3 = vcmask 7168   ;;  %v575_v17 = vmov 0.0   ;;  %vm403_vm4 = vcmask 1024  }
 0x141   : > { %397 = vst.msk [vmem:[%s857_s3] sm:$0xff] %vm396_vm3, %v575_v17 }
 0x142   : > { %398 = vst.msk [vmem:[%s857_s3 + $0x8] sm:$0xff] %vm396_vm3, %v575_v17 }
 0x143   : > { %399 = vst.msk [vmem:[%s857_s3 + $0x10] sm:$0xff] %vm396_vm3, %v575_v17 }
 0x144   : > { %400 = vst.msk [vmem:[%s857_s3 + $0x18] sm:$0xff] %vm396_vm3, %v575_v17 }
 0x145   : > { %401 = vst.msk [vmem:[%s857_s3 + $0x20] sm:$0xff] %vm396_vm3, %v575_v17 }
 0x146   : > { %402 = vst.msk [vmem:[%s857_s3 + $0x28] sm:$0xff] %vm396_vm3, %v575_v17 }
 0x147   : > { %405 = vst.msk [vmem:[%s858_s4] sm:$0xff] %vm396_vm3, %v575_v17 }
 0x148   : > { %406 = vst.msk [vmem:[%s858_s4 + $0x8] sm:$0xff] %vm396_vm3, %v575_v17 }
 0x149   : > { %407 = vst.msk [vmem:[%s858_s4 + $0x10] sm:$0xff] %vm396_vm3, %v575_v17 }
 0x14a   : > { %408 = vst.msk [vmem:[%s858_s4 + $0x18] sm:$0xff] %vm396_vm3, %v575_v17 }
 0x14b   : > { %409 = vst.msk [vmem:[%s858_s4 + $0x20] sm:$0xff] %vm396_vm3, %v575_v17 }
 0x14c   : > { %410 = vst.msk [vmem:[%s858_s4 + $0x28] sm:$0xff] %vm396_vm3, %v575_v17 }
 0x14d   : > { %404 = vst.msk [vmem:[%s857_s3 + $0x30] sm:$0x3] %vm403_vm4, %v575_v17 }
 0x14e   : > { %411 = vst.msk [vmem:[%s858_s4 + $0x30] sm:$0x3] %vm403_vm4, %v575_v17 }
 0x14f PF: > { %v412_v18 = vld [vmem:[%s857_s3] sm:$0xff]  ;;  %vm426_vm5 = vcmask 7168   ;;  %v413_v19 = vld [vmem:[%s857_s3 + $0x8] sm:$0xff]  ;;  %v414_v20 = vld [vmem:[%s857_s3 + $0x10] sm:$0xff]  ;;  %vm433_vm6 = vcmask 1024  }
 0x150   : > { %v419_v21 = vadd.f32 %v412_v18, %v356_v3  ;;  %v420_v22 = vadd.f32 %v413_v19, %v358_v8  ;;  %v421_v23 = vadd.f32 %v414_v20, %v360_v4  ;;  %v415_v24 = vld [vmem:[%s857_s3 + $0x18] sm:$0xff]  ;;  %v416_v25 = vld [vmem:[%s857_s3 + $0x20] sm:$0xff]  ;;  %v417_v26 = vld [vmem:[%s857_s3 + $0x28] sm:$0xff] }
 0x151   : > { %v422_v27 = vadd.f32 %v415_v24, %v362_v11  ;;  %v423_v29 = vadd.f32 %v416_v25, %v364_v9  ;;  %v435_v30 = vld [vmem:[%s858_s4] sm:$0xff]  ;;  %v424_v31 = vadd.f32 %v417_v26, %v366_v5  ;;  %v436_v32 = vld [vmem:[%s858_s4 + $0x8] sm:$0xff]  ;;  %v437_v34 = vld [vmem:[%s858_s4 + $0x10] sm:$0xff] }
 0x152   : > { %427 = vst.msk [vmem:[%s857_s3] sm:$0xff] %vm426_vm5, %v419_v21  ;;  %v442_v35 = vadd.f32 %v435_v30, %v378_v6  ;;  %v438_v36 = vld [vmem:[%s858_s4 + $0x18] sm:$0xff]  ;;  %v443_v37 = vadd.f32 %v436_v32, %v380_v14  ;;  %v439_v38 = vld [vmem:[%s858_s4 + $0x20] sm:$0xff]  ;;  %v444_v39 = vadd.f32 %v437_v34, %v382_v7 }
 0x153   : > { %428 = vst.msk [vmem:[%s857_s3 + $0x8] sm:$0xff] %vm426_vm5, %v420_v22  ;;  %v440_v40 = vld [vmem:[%s858_s4 + $0x28] sm:$0xff]  ;;  %v445_v41 = vadd.f32 %v438_v36, %v384_v12  ;;  %v446_v43 = vadd.f32 %v439_v38, %v386_v16 }
 0x154   : > { %v418_v28 = vld [vmem:[%s857_s3 + $0x30] sm:$0x3]  ;;  %429 = vst.msk [vmem:[%s857_s3 + $0x10] sm:$0xff] %vm426_vm5, %v421_v23  ;;  %v447_v44 = vadd.f32 %v440_v40, %v388_v13 }
 0x155   : > { %v425_v33 = vadd.f32 %v418_v28, %v369_v10  ;;  %430 = vst.msk [vmem:[%s857_s3 + $0x18] sm:$0xff] %vm426_vm5, %v422_v27  ;;  %v441_v42 = vld [vmem:[%s858_s4 + $0x30] sm:$0x3] }
 0x156   : > { %431 = vst.msk [vmem:[%s857_s3 + $0x20] sm:$0xff] %vm426_vm5, %v423_v29  ;;  %v448_v45 = vadd.f32 %v441_v42, %v391_v15 }
 0x157   : > { %432 = vst.msk [vmem:[%s857_s3 + $0x28] sm:$0xff] %vm426_vm5, %v424_v31 }
 0x158   : > { %434 = vst.msk [vmem:[%s857_s3 + $0x30] sm:$0x3] %vm433_vm6, %v425_v33 }
 0x159   : > { %449 = vst.msk [vmem:[%s858_s4] sm:$0xff] %vm426_vm5, %v442_v35 }
 0x15a   : > { %450 = vst.msk [vmem:[%s858_s4 + $0x8] sm:$0xff] %vm426_vm5, %v443_v37 }
 0x15b   : > { %451 = vst.msk [vmem:[%s858_s4 + $0x10] sm:$0xff] %vm426_vm5, %v444_v39 }
 0x15c   : > { %452 = vst.msk [vmem:[%s858_s4 + $0x18] sm:$0xff] %vm426_vm5, %v445_v41 }
 0x15d   : > { %453 = vst.msk [vmem:[%s858_s4 + $0x20] sm:$0xff] %vm426_vm5, %v446_v43 }
 0x15e   : > { %454 = vst.msk [vmem:[%s858_s4 + $0x28] sm:$0xff] %vm426_vm5, %v447_v44 }
 0x15f   : > { %455 = vst.msk [vmem:[%s858_s4 + $0x30] sm:$0x3] %vm433_vm6, %v448_v45 }
 0x160 PF: > { %p12_p9 = scmp.ge.s32.totalorder %s618_s19, 4   ;;  %s859_s15 = smov %s568_s16 }
 0x161   : > { %s860_s16 = smov %s627_s22  ;;  %s861_s17 = smov %s618_s19 }
 0x162   :  { %14 = sbr.rel (!%p12_p9) target bundleno = 2 (0x2), region = 113 }

</bundles_post_ra>
